<compile_context>
chip_gen: v7x
topology: tpu7x:2x2x1
jax: 0.10.0
libtpu: 0.0.40
codegen_flags: <defaults>
</compile_context>

<pallas_src>
import functools

import jax
import jax.numpy as jnp
from jax import lax
from jax.experimental import pallas as pl
from jax.experimental.pallas import tpu as pltpu

EPS = 1e-5
NEG_SLOPE = 0.2
KSIZE = 4      # the module always uses a 4x4 conv kernel
LANE = 128
SUBLANE = 8


def _round_up(x, m):
    return (x + m - 1) // m * m


def _block_kernel(prep_ref, w_ref, o_ref, *, inv_p):
    """One (batch instance, C_out tile) step.

    prep_ref: (1, KK, P_pad)   bf16  im2col operand, KK = 16*C_in, lane-dense
    w_ref:    (TCO, KK)        bf16  flattened weights for this C_out tile
    o_ref:    (1, TCO, P_pad)  out   lane-dense output
    """
    # Single MXU matmul, f32 accumulation.
    y = jnp.dot(w_ref[...], prep_ref[0],
                preferred_element_type=jnp.float32)              # (TCO, P_pad) f32

    # Single-pass InstanceNorm statistics (biased). Pad lanes / pad channels are exactly
    # zero, so raw sums divided by the true P are correct without masking.
    s1 = jnp.sum(y, axis=1, keepdims=True)                       # (TCO, 1)
    s2 = jnp.sum(y * y, axis=1, keepdims=True)                   # (TCO, 1)
    mean = s1 * inv_p
    var = jnp.maximum(s2 * inv_p - mean * mean, 0.0)

    # Fused normalize + LeakyReLU(0.2), then one unmasked lane-dense store.
    y = (y - mean) * lax.rsqrt(var + EPS)
    y = jnp.where(y >= 0, y, NEG_SLOPE * y)
    o_ref[0] = y.astype(o_ref.dtype)


def _prep_im2col(xp, s, ho, wo, p_pad):
    """Reflect-padded xp (N, C, Hp, Wp) -> bf16 im2col (N, 16*C, P_pad), zero-padded lanes."""
    n, c, _, _ = xp.shape
    k = KSIZE
    planes = []
    for ki in range(k):          # kernel row
        for kj in range(k):      # kernel col
            planes.append(xp[:, :, ki:ki + ho * s:s, kj:kj + wo * s:s])   # (N, C, Ho, Wo)
    prep = jnp.stack(planes, axis=1).reshape(n, k * k * c, ho * wo)       # rows: (ki, kj, c)
    prep = jnp.pad(prep, ((0, 0), (0, 0), (0, p_pad - ho * wo)))
    return prep.astype(jnp.bfloat16)


def block_forward(x, weight, bias, stride, out_dtype=None):
    """x: (N, C_in, H, W) NCHW; weight: (C_out, C_in, 4, 4); bias: (C_out,)."""
    del bias  # Cancelled exactly by InstanceNorm's mean subtraction — never touches the kernel.
    k = KSIZE
    s = int(stride)
    n, c_in, h, w = x.shape
    c_out = weight.shape[0]
    out_dtype = x.dtype if out_dtype is None else out_dtype

    # Reflect padding (PyTorch padding_mode='reflect', pad=1) — wrapper glue.
    xp = jnp.pad(x, ((0, 0), (0, 0), (1, 1), (1, 1)), mode="reflect")
    hp, wp = h + 2, w + 2
    ho = (hp - k) // s + 1
    wo = (wp - k) // s + 1
    p = ho * wo
    p_pad = _round_up(p, LANE)
    kk = k * k * c_in

    # C_out tiling: pad to sublane multiple; tile at 256 for large C_out so the per-step
    # f32 output block stays VMEM-friendly and adds a second parallel (megacore) axis.
    c_out_pad = _round_up(c_out, SUBLANE)
    if c_out_pad > 256:
        c_out_pad = _round_up(c_out_pad, 256)
        tco = 256
    else:
        tco = c_out_pad
    n_ct = c_out_pad // tco

    prep = _prep_im2col(xp, s, ho, wo, p_pad)                             # (N, KK, P_pad) bf16

    # Weights flattened with rows ordered (ki, kj, c) to match the im2col row order.
    w_mat = jnp.transpose(weight, (0, 2, 3, 1)).reshape(c_out, kk)
    w_mat = jnp.pad(w_mat, ((0, c_out_pad - c_out), (0, 0))).astype(jnp.bfloat16)

    # Generation-aware VMEM limit (~80% of capacity), fall back to compiler default.
    try:
        vmem_limit = int(pltpu.get_tpu_info().vmem_capacity_bytes * 0.8)
    except Exception:
        vmem_limit = None

    kernel = functools.partial(_block_kernel, inv_p=1.0 / p)
    out = pl.pallas_call(
        kernel,
        out_shape=jax.ShapeDtypeStruct((n, c_out_pad, p_pad), out_dtype),
        grid_spec=pltpu.PrefetchScalarGridSpec(
            num_scalar_prefetch=0,
            grid=(n, n_ct),
            in_specs=[
                # Operand block index ignores the C_out-tile axis -> re-DMA is skipped
                # while the (constant) weight tile changes. Weights are tiny.
                pl.BlockSpec((1, kk, p_pad), lambda i, j: (i, 0, 0)),
                pl.BlockSpec((tco, kk), lambda i, j: (j, 0)),
            ],
            out_specs=pl.BlockSpec((1, tco, p_pad), lambda i, j: (i, j, 0)),
        ),
        compiler_params=pltpu.CompilerParams(
            dimension_semantics=("parallel", "parallel"),
            vmem_limit_bytes=vmem_limit),
    )(prep, w_mat)                                                        # (N, C_out_pad, P_pad)

    # Drop channel/lane padding; (N, C_out, P) -> NCHW is a cheap metadata reshape.
    return out[:, :c_out, :p].reshape(n, c_out, ho, wo)


def block_forward_ref(x, weight, bias, stride):
    """Pure-JAX f32 reference (conv + bias + instance norm + leaky relu) for validation."""
    xp = jnp.pad(x, ((0, 0), (0, 0), (1, 1), (1, 1)), mode="reflect")
    y = lax.conv_general_dilated(
        xp, weight, window_strides=(stride, stride), padding="VALID",
        dimension_numbers=("NCHW", "OIHW", "NCHW"))
    y = y + bias.reshape(1, -1, 1, 1)
    mean = jnp.mean(y, axis=(2, 3), keepdims=True)
    var = jnp.mean((y - mean) ** 2, axis=(2, 3), keepdims=True)
    y = (y - mean) * lax.rsqrt(var + EPS)
    return jnp.where(y >= 0, y, NEG_SLOPE * y)


if __name__ == "__main__":
    key = jax.random.PRNGKey(0)
    k_x, k_w, k_b = jax.random.split(key, 3)

    # Small shapes consistent with the module.
    N, C_in, H, W = 2, 4, 16, 16
    C_out, stride = 8, 2

    x = jax.random.normal(k_x, (N, C_in, H, W), dtype=jnp.float32)
    weight = jax.random.normal(k_w, (C_out, C_in, 4, 4), dtype=jnp.float32) * 0.1
    bias = jax.random.normal(k_b, (C_out,), dtype=jnp.float32) * 0.1

    fwd = jax.jit(block_forward, static_argnums=(3,))
    out = jax.block_until_ready(fwd(x, weight, bias, stride))
    ref = jax.block_until_ready(block_forward_ref(x, weight, bias, stride))

    assert out.shape == ref.shape == (N, C_out, H // stride, W // stride)
    # bf16 matmul operands vs f32 reference -> a few e-3 absolute after the norm.
    err = jnp.max(jnp.abs(out - ref))
    assert jnp.allclose(out, ref, atol=3e-2, rtol=3e-2), f"max abs err {err}"

    print("KERNEL_OK")
</pallas_src>

<mosaic_0001>
module attributes {stable_mosaic.version = 11 : i64} {
  func.func @_block_kernel(%arg0: i32, %arg1: i32, %arg2: memref<1x64x128xbf16, #tpu.memory_space<vmem>>, %arg3: memref<8x64xbf16, #tpu.memory_space<vmem>>, %arg4: memref<1x8x128xf32, #tpu.memory_space<vmem>>) attributes {dimension_semantics = [#tpu.dimension_semantics<parallel>, #tpu.dimension_semantics<parallel>], iteration_bounds = array<i64: 2, 1>, scalar_prefetch = 0 : i64, scratch_operands = 0 : i64, tpu.core_type = #tpu.core_type<tc>, window_params = [{transform_indices = @transform_0, window_bounds = array<i64: 1, 64, 128>}, {transform_indices = @transform_1, window_bounds = array<i64: 8, 64>}, {transform_indices = @transform_2, window_bounds = array<i64: 1, 8, 128>}]} {
    %c0 = arith.constant 0 : index
    %c0_0 = arith.constant 0 : index
    %0 = vector.load %arg3[%c0, %c0_0] : memref<8x64xbf16, #tpu.memory_space<vmem>>, vector<8x64xbf16>
    %c0_1 = arith.constant 0 : index
    %c0_2 = arith.constant 0 : index
    %c0_3 = arith.constant 0 : index
    %1 = vector.load %arg2[%c0_1, %c0_2, %c0_3] : memref<1x64x128xbf16, #tpu.memory_space<vmem>>, vector<1x64x128xbf16>
    %2 = vector.shape_cast %1 : vector<1x64x128xbf16> to vector<64x128xbf16>
    %cst = arith.constant dense<0.000000e+00> : vector<8x128xf32>
    %3 = tpu.matmul %0, %2, %cst {dimension_numbers = #tpu.dot_dimension_numbers<[1], [0], [0], [1], [0, 0, 1, 1], [], []>} : vector<8x64xbf16>, vector<64x128xbf16>, vector<8x128xf32> -> vector<8x128xf32>
    %cst_4 = arith.constant dense<0.000000e+00> : vector<8xf32>
    %4 = vector.multi_reduction <add>, %3, %cst_4 [1] : vector<8x128xf32> to vector<8xf32>
    %5 = vector.shape_cast %4 : vector<8xf32> to vector<8x1xf32>
    %6 = arith.mulf %3, %3 : vector<8x128xf32>
    %cst_5 = arith.constant dense<0.000000e+00> : vector<8xf32>
    %7 = vector.multi_reduction <add>, %6, %cst_5 [1] : vector<8x128xf32> to vector<8xf32>
    %8 = vector.shape_cast %7 : vector<8xf32> to vector<8x1xf32>
    %cst_6 = arith.constant 1.562500e-02 : f32
    %9 = vector.broadcast %cst_6 : f32 to vector<8x1xf32>
    %10 = arith.mulf %5, %9 : vector<8x1xf32>
    %cst_7 = arith.constant 1.562500e-02 : f32
    %11 = vector.broadcast %cst_7 : f32 to vector<8x1xf32>
    %12 = arith.mulf %8, %11 : vector<8x1xf32>
    %13 = arith.mulf %10, %10 : vector<8x1xf32>
    %14 = arith.subf %12, %13 : vector<8x1xf32>
    %cst_8 = arith.constant 0.000000e+00 : f32
    %15 = vector.broadcast %cst_8 : f32 to vector<8x1xf32>
    %16 = arith.maximumf %14, %15 : vector<8x1xf32>
    %17 = vector.broadcast %10 : vector<8x1xf32> to vector<8x128xf32>
    %18 = arith.subf %3, %17 : vector<8x128xf32>
    %cst_9 = arith.constant 9.99999974E-6 : f32
    %19 = vector.broadcast %cst_9 : f32 to vector<8x1xf32>
    %20 = arith.addf %16, %19 : vector<8x1xf32>
    %21 = math.rsqrt %20 : vector<8x1xf32>
    %22 = vector.broadcast %21 : vector<8x1xf32> to vector<8x128xf32>
    %23 = arith.mulf %18, %22 : vector<8x128xf32>
    %cst_10 = arith.constant 0.000000e+00 : f32
    %24 = vector.broadcast %cst_10 : f32 to vector<8x128xf32>
    %25 = arith.cmpf oge, %23, %24 : vector<8x128xf32>
    %cst_11 = arith.constant 2.000000e-01 : f32
    %26 = vector.broadcast %cst_11 : f32 to vector<8x128xf32>
    %27 = arith.mulf %26, %23 : vector<8x128xf32>
    %28 = arith.select %25, %23, %27 : vector<8x128xi1>, vector<8x128xf32>
    %c0_12 = arith.constant 0 : index
    %c0_13 = arith.constant 0 : index
    %c0_14 = arith.constant 0 : index
    %29 = vector.load %arg4[%c0_12, %c0_13, %c0_14] : memref<1x8x128xf32, #tpu.memory_space<vmem>>, vector<1x8x128xf32>
    %30 = vector.shape_cast %29 : vector<1x8x128xf32> to vector<8x128xf32>
    %31 = vector.shape_cast %28 : vector<8x128xf32> to vector<1x8x128xf32>
    tpu.vector_store %arg4[%c0_12, %c0_13, %c0_14], %31 {strides = array<i32>} : memref<1x8x128xf32, #tpu.memory_space<vmem>>, vector<1x8x128xf32>,
    return
  }
  func.func @transform_0(%arg0: i32, %arg1: i32) -> (i32, i32, i32) {
    %c0_i32 = arith.constant 0 : i32
    %c0_i32_0 = arith.constant 0 : i32
    %c0_i32_1 = arith.constant 0 : i32
    return %arg0, %c0_i32, %c0_i32_0 : i32, i32, i32
  }
  func.func @transform_1(%arg0: i32, %arg1: i32) -> (i32, i32) {
    %c0_i32 = arith.constant 0 : i32
    %c0_i32_0 = arith.constant 0 : i32
    return %arg1, %c0_i32 : i32, i32
  }
  func.func @transform_2(%arg0: i32, %arg1: i32) -> (i32, i32, i32) {
    %c0_i32 = arith.constant 0 : i32
    %c0_i32_0 = arith.constant 0 : i32
    return %arg0, %arg1, %c0_i32 : i32, i32, i32
  }
}

</mosaic_0001>

<bundles_post_ra>
// kernel: block_forward.1
= control target key start
LH: loop header
LB: loop body
LE: loop exit
PB: predicated region body
PF: predicated region fallthrough
CT: control target
= control target key end

     0   :  { %s469_s9 = smov 0   ;;  %s471_s10 = smov 0   ;;  %s509_s0 = inlined_call_operand.vmem [shape: bf16[2,64,128], index: 0, kind: input, shape index: {}]   ;;  %s510_s1 = inlined_call_operand.vmem [shape: bf16[8,64], index: 1, kind: input, shape index: {}]   ;;  %s511_s2 = inlined_call_operand.vmem [shape: f32[2,8,128], index: 2, kind: output, shape index: {}]  }
   0x1   :  { %s473_s11 = smov 0  }
   0x2 LB: > { %s24_s12 = sadd.s32 1, %s446_s10  ;;  %p367_p0 = scmp.ge.s32.totalorder %s450_s11, 1  ;;  %s450_s11 = sphi %s473_s11, %s12_s11   ;;  %s446_s10 = sphi %s471_s10, %s513_s10   ;;  %s442_s9 = sphi %s469_s9, %s512_s9  }
   0x3   : > { %p26_p1 = scmp.ge.s32.totalorder %s24_s12, 2  ;;  %p135_p2 = scmp.lt.s32.totalorder %s450_s11, 3 }
   0x5   : > { %s515_s12 = smov (%p26_p1, %s24_s12), 0  ;;  %p136_p3 = pnand %p367_p0, %p135_p2 }
   0x6   : > { %p163_p4 = scmp.lt.s32.totalorder (!%p136_p3), %s442_s9, 1  ;;  %v452_v0 = vmov (!%p136_p3), 0.0   ;;  %vm453_vm0 = vmmov (!%p136_p3), 0   ;;  %v180_v5 = vld [vmem:[%s510_s1] sm:$0xf] (!%p136_p3)  ;;  %vm213_vm1 = vcmask (!%p136_p3), 523264  }
   0x7   : > { %139 = sbr.rel (%p136_p3) target bundleno = 416 (0x1a0), region = 28  ;;  %384 = vmatprep.subr.bf16.mxu0 (!%p136_p3), %v452_v0  ;;  %392 = vmatprep.mubr.msk.bf16.mxu0 (!%p136_p3), %vm453_vm0, %v452_v0 }
   0xe   : > { %s517_s9 = smov (!%p163_p4, %s442_s9), 1 }
   0xf   : > { %s378_s13 = sshll.u32 %s517_s9, 5  ;;  %s370_s19 = sshll.u32 %s517_s9, 3 }
  0x10   : > { %s167_s16 = scalar_lea.vmem %s509_s0, %s378_s13  ;;  %s178_s22 = scalar_lea.vmem %s511_s2, %s370_s19 }
  0x11   : > { %v422_v1 = vld [vmem:[%s167_s16] sm:$0xff]   ;;  %v423_v2 = vld [vmem:[%s167_s16 + $0x8] sm:$0xff]   ;;  %v424_v3 = vld [vmem:[%s167_s16 + $0x10] sm:$0xff]  }
  0x12   : > { %385 = vmatpush3.bf16.msra.mxu0 %v422_v1  ;;  %v425_v4 = vld [vmem:[%s167_s16 + $0x18] sm:$0xff]  }
  0x13   : > { %386 = vmatprep.subr.bf16.mxu0 %v452_v0 }
  0x16   : > { %387 = vmatpush3.bf16.msra.mxu0 %v423_v2 }
  0x17   : > { %388 = vmatprep.subr.bf16.mxu0 %v452_v0 }
  0x1a   : > { %389 = vmatpush3.bf16.msra.mxu0 %v424_v3 }
  0x1b   : > { %390 = vmatprep.subr.bf16.mxu0 %v452_v0 }
  0x1e   : > { %391 = vmatpush3.bf16.msra.mxu0 %v425_v4 }
  0x21   : > { %393 = vmatmul.mubr.msk.bf16.vlgmr.msra.gmra.mrb[0].mxu0 %vm213_vm1, %v180_v5 }
  0xf4   : > { %v251_v6 = vpop.f32.mrb[0].mxu0 }
  0xf5   : > { %257 = vadd.xlane.f32.xlu0 %v251_v6  ;;  %v394_v7 = vpop.f32.mrb[1].mxu0  ;;  %v259_v10 = vmul.f32 %v251_v6, %v251_v6 }
  0xf6   : > { %v254_v8 = vpop.f32.mrb[2].mxu0 }
  0xf7   : > { %v395_v9 = vpop.f32.mrb[3].mxu0 }
  0xf9   : > { %260 = vadd.xlane.f32.xlu0 %v259_v10 }
 0x182   : > { %v258_v11 = vpop.xlane.xlu0 %257 }
 0x183   : > { %v262_v12 = vmul.f32 0.015625, %v258_v11 }
 0x185   : > { %v264_v14 = vmul.f32 %v262_v12, %v262_v12  ;;  %v267_v19 = vsub.f32 %v251_v6, %v262_v12 }
 0x186   : > { %v261_v13 = vpop.xlane.xlu0 %260 }
 0x187   : > { %v263_v15 = vmul.f32 0.015625, %v261_v13 }
 0x189   : > { %v265_v16 = vsub.f32 %v263_v15, %v264_v14 }
 0x18b   : > { %v266_v17 = vmax.f32 %v265_v16, 0.0 }
 0x18d   : > { %v268_v18 = vadd.f32 1e-05, %v266_v17 }
 0x18f   : > { %426 = vrsqrt.f32 %v268_v18 }
 0x199   : > { %v427_v20 = vpop.eup %426 }
 0x19a   : > { %v270_v21 = vmul.f32 %v427_v20, %v267_v19 }
 0x19c   : > { %vm271_vm2 = vcmp.ge.f32.partialorder %v270_v21, 0.0  ;;  %v272_v22 = vmul.f32 0.2, %v270_v21 }
 0x19e   : > { %v273_v23 = vsel %vm271_vm2, %v270_v21, %v272_v22 }
 0x19f   : > { %274 = vst [vmem:[%s178_s22] sm:$0xff] %v273_v23 }
 0x1a0 PF: > { %s12_s11 = sadd.s32 1, %s450_s11   ;;  %s512_s9 = smov %s446_s10 }
 0x1a1   : > { %p9_p5 = scmp.ge.s32.totalorder %s12_s11, 4   ;;  %s513_s10 = smov %s515_s12 }
 0x1a3   :  { %11 = sbr.rel (!%p9_p5) target bundleno = 2 (0x2), region = 61 }

</bundles_post_ra>
